<compile_context>
chip_gen: v5e
topology: v5e:2x2
jax: 0.10.0
libtpu: 0.0.40
codegen_flags: <defaults>
</compile_context>

<pallas_src>
import functools

import jax
import jax.numpy as jnp
import numpy as np
from jax import lax
from jax.experimental import pallas as pl
from jax.experimental.pallas import tpu as pltpu


def _set_criterion_kernel(logits_ref, slab_ref, tlen_ref,   # VMEM inputs
                          out_ref,                           # SMEM (8,) f32 results
                          acc_ref, card_ref,                 # scratch accumulators
                          *, num_classes, num_boxes):
    B, QT, V = logits_ref.shape
    qi = pl.program_id(0)
    neg = jnp.float32(-1e30)
    eps = jnp.float32(1e-7)

    # -------- init accumulators on the first tile ----------------------------
    @pl.when(qi == 0)
    def _init():
        for i in range(8):
            acc_ref[i] = 0.0
        card_ref[...] = jnp.zeros_like(card_ref)

    logits = logits_ref[...].astype(jnp.float32)            # [B, QT, V] (lane = class)
    slab = slab_ref[...]                                     # [B, QT, 16]

    tgt = slab[:, :, 0:1].astype(jnp.int32)                  # [B, QT, 1] target class
    mask = slab[:, :, 1:2]                                    # matched-query mask
    w_ce = slab[:, :, 2:3]                                    # empty_weight[tgt] * valid
    valid = slab[:, :, 3:4]                                   # 1 for real queries, 0 pad
    pb = slab[:, :, 4:8]                                      # pred boxes   (cx,cy,w,h)
    tb = slab[:, :, 8:12]                                     # target boxes (cx,cy,w,h)

    cls = lax.broadcasted_iota(jnp.int32, (B, QT, V), 2)

    # -------- fused class-axis (lane) reductions ------------------------------
    max_fg = jnp.max(jnp.where(cls < num_classes, logits, neg), axis=-1, keepdims=True)
    noobj = jnp.sum(jnp.where(cls == num_classes, logits, 0.0), axis=-1, keepdims=True)
    m = jnp.maximum(max_fg, noobj)                            # overall max, no 2nd pass
    lse = m + jnp.log(jnp.sum(jnp.exp(logits - m), axis=-1, keepdims=True))
    logit_t = jnp.sum(jnp.where(cls == tgt, logits, 0.0), axis=-1, keepdims=True)
    logp_t = logit_t - lse                                    # log_softmax at target

    # -------- loss_labels: weighted cross entropy ------------------------------
    acc_ref[0] += jnp.sum(w_ce * (-logp_t))                   # sum(weight * nll)
    acc_ref[1] += jnp.sum(w_ce)                               # sum(weight)

    # -------- class_error on matched queries (exact argmax tie-break) ----------
    # argmax == tgt  <=>  target logit attains the max AND no lower class ties it
    max_lo = jnp.max(jnp.where(cls < tgt, logits, neg), axis=-1, keepdims=True)
    correct = jnp.where((logit_t >= m) & (logit_t > max_lo), 1.0, 0.0) * mask
    acc_ref[2] += jnp.sum(correct)
    acc_ref[3] += jnp.sum(mask)

    # -------- cardinality: argmax != no-object  <=>  max_fg >= noobj -----------
    not_noobj = jnp.where(max_fg >= noobj, 1.0, 0.0) * valid  # [B, QT, 1]
    card_ref[...] += jnp.sum(not_noobj, axis=1, keepdims=True)  # [B, 1, 1]

    # -------- box L1 loss (matched queries only) -------------------------------
    l1 = jnp.sum(jnp.abs(pb - tb), axis=-1, keepdims=True) * mask
    acc_ref[4] += jnp.sum(l1)

    # -------- GIoU loss (cxcywh -> xyxy, diagonal pairs only) ------------------
    def to_xyxy(bx):
        cx = bx[:, :, 0:1]
        cy = bx[:, :, 1:2]
        w = bx[:, :, 2:3]
        h = bx[:, :, 3:4]
        return cx - 0.5 * w, cy - 0.5 * h, cx + 0.5 * w, cy + 0.5 * h

    px0, py0, px1, py1 = to_xyxy(pb)
    tx0, ty0, tx1, ty1 = to_xyxy(tb)
    inter = (jnp.maximum(jnp.minimum(px1, tx1) - jnp.maximum(px0, tx0), 0.0) *
             jnp.maximum(jnp.minimum(py1, ty1) - jnp.maximum(py0, ty0), 0.0))
    area_p = (px1 - px0) * (py1 - py0)
    area_t = (tx1 - tx0) * (ty1 - ty0)
    union = area_p + area_t - inter
    iou = inter / jnp.maximum(union, eps)
    earea = ((jnp.maximum(px1, tx1) - jnp.minimum(px0, tx0)) *
             (jnp.maximum(py1, ty1) - jnp.minimum(py0, ty0)))
    giou = iou - (earea - union) / jnp.maximum(earea, eps)
    # where-based masking: unmatched (zero) boxes can never poison the sum
    acc_ref[5] += jnp.sum(jnp.where(mask > 0.0, 1.0 - giou, 0.0))

    # -------- finalize on the last tile ----------------------------------------
    @pl.when(qi == pl.num_programs(0) - 1)
    def _fin():
        loss_ce = acc_ref[0] / jnp.maximum(acc_ref[1], 1e-6)
        class_error = 100.0 - 100.0 * acc_ref[2] / jnp.maximum(acc_ref[3], 1.0)
        cerr = jnp.sum(jnp.abs(card_ref[...] - tlen_ref[...])) / float(B)
        out_ref[0] = loss_ce
        out_ref[1] = class_error
        out_ref[2] = cerr
        out_ref[3] = acc_ref[4] / num_boxes
        out_ref[4] = acc_ref[5] / num_boxes
        out_ref[5] = 0.0
        out_ref[6] = 0.0
        out_ref[7] = 0.0


def set_criterion(pred_logits, pred_boxes, target_classes, match_mask,
                  tgt_boxes_full, tgt_lengths, eos_coef, num_boxes,
                  max_block_bytes=4 * 1024 * 1024):
    """Fused DETR SetCriterion forward (labels / cardinality / boxes losses)."""
    B, Q, V = pred_logits.shape
    num_classes = V - 1
    f32 = jnp.float32

    # Native-layout tiling over queries: single block for DETR-sized inputs,
    # sublane-aligned tiles (multiple of 8) only when the logits block would
    # exceed the per-block VMEM budget (safe on v7x's 64 MiB as well).
    bytes_per_q = B * V * 4
    if Q * bytes_per_q <= max_block_bytes:
        q_block, q_pad = Q, Q
    else:
        q_block = max(8, (max_block_bytes // bytes_per_q) // 8 * 8)
        q_pad = q_block * pl.cdiv(Q, q_block)
    pad = q_pad - Q

    # Dominant array: consumed untouched (no transpose, no pad in the common case).
    # NOTE: the kernel upcasts, so feeding bf16 logits from the model halves HBM
    # traffic with no kernel change.
    logits = pred_logits
    if pad:
        logits = jnp.pad(logits, ((0, 0), (0, pad), (0, 0)))

    # Pack the small per-query inputs into one [B, Q_pad, 16] slab (one DMA).
    tgt_cls = target_classes.astype(jnp.int32)
    w_ce = jnp.where(tgt_cls == num_classes, f32(eos_coef), f32(1.0))
    slab = jnp.concatenate([
        tgt_cls.astype(f32)[..., None],          # 0: target class
        match_mask.astype(f32)[..., None],       # 1: matched-query mask
        w_ce[..., None],                         # 2: CE weight (empty_weight[tgt])
        jnp.ones((B, Q, 1), f32),                # 3: valid (real query)
        pred_boxes.astype(f32),                  # 4-7: pred boxes cxcywh
        tgt_boxes_full.astype(f32),              # 8-11: matched target boxes
        jnp.zeros((B, Q, 4), f32),               # 12-15: pad
    ], axis=-1)
    if pad:
        slab = jnp.pad(slab, ((0, 0), (0, pad), (0, 0)))   # pads -> weight/valid/mask 0

    tlen = tgt_lengths.astype(f32).reshape(B, 1, 1)

    kernel = functools.partial(
        _set_criterion_kernel,
        num_classes=num_classes,
        num_boxes=max(float(num_boxes), 1.0),   # matches torch clamp(..., min=1).item()
    )

    grid_spec = pltpu.PrefetchScalarGridSpec(
        num_scalar_prefetch=0,
        grid=(q_pad // q_block,),
        in_specs=[
            pl.BlockSpec((B, q_block, V), lambda q: (0, q, 0)),    # logits, native layout
            pl.BlockSpec((B, q_block, 16), lambda q: (0, q, 0)),   # packed per-query slab
            pl.BlockSpec((B, 1, 1), lambda q: (0, 0, 0)),          # tgt_lengths
        ],
        out_specs=pl.BlockSpec(memory_space=pltpu.MemorySpace.SMEM),
        scratch_shapes=[pltpu.SMEM((8,), jnp.float32),             # global partial sums
                        pltpu.VMEM((B, 1, 1), jnp.float32)],       # per-batch cardinality
    )

    out = pl.pallas_call(
        kernel,
        out_shape=jax.ShapeDtypeStruct((8,), jnp.float32),
        grid_spec=grid_spec,
        compiler_params=pltpu.CompilerParams(
            dimension_semantics=("arbitrary",),
            vmem_limit_bytes=32 * 1024 * 1024),
    )(logits, slab, tlen)

    return {
        "loss_ce": out[0],
        "class_error": out[1],
        "cardinality_error": out[2],
        "loss_bbox": out[3],
        "loss_giou": out[4],
    }


def _reference(pred_logits, pred_boxes, target_classes, match_mask,
               tgt_boxes_full, tgt_lengths, eos_coef, num_boxes):
    """Pure-JAX reference mirroring the PyTorch SetCriterion math."""
    B, Q, V = pred_logits.shape
    logp = jax.nn.log_softmax(pred_logits, axis=-1)
    logp_t = jnp.take_along_axis(logp, target_classes[..., None], axis=-1)[..., 0]
    w = jnp.where(target_classes == V - 1, eos_coef, 1.0)
    loss_ce = -jnp.sum(w * logp_t) / jnp.sum(w)

    pred_cls = jnp.argmax(pred_logits, axis=-1)
    correct = (pred_cls == target_classes).astype(jnp.float32) * match_mask
    class_error = 100.0 - 100.0 * jnp.sum(correct) / jnp.sum(match_mask)

    card_pred = jnp.sum((pred_cls != V - 1).astype(jnp.float32), axis=1)
    card_err = jnp.mean(jnp.abs(card_pred - tgt_lengths))

    l1 = jnp.sum(jnp.abs(pred_boxes - tgt_boxes_full), axis=-1) * match_mask
    loss_bbox = jnp.sum(l1) / num_boxes

    def xyxy(b):
        cx, cy, w_, h = b[..., 0], b[..., 1], b[..., 2], b[..., 3]
        return cx - 0.5 * w_, cy - 0.5 * h, cx + 0.5 * w_, cy + 0.5 * h

    px0, py0, px1, py1 = xyxy(pred_boxes)
    tx0, ty0, tx1, ty1 = xyxy(tgt_boxes_full)
    inter = (jnp.maximum(jnp.minimum(px1, tx1) - jnp.maximum(px0, tx0), 0.0) *
             jnp.maximum(jnp.minimum(py1, ty1) - jnp.maximum(py0, ty0), 0.0))
    union = (px1 - px0) * (py1 - py0) + (tx1 - tx0) * (ty1 - ty0) - inter
    iou = inter / jnp.maximum(union, 1e-7)
    earea = ((jnp.maximum(px1, tx1) - jnp.minimum(px0, tx0)) *
             (jnp.maximum(py1, ty1) - jnp.minimum(py0, ty0)))
    giou = iou - (earea - union) / jnp.maximum(earea, 1e-7)
    loss_giou = jnp.sum(jnp.where(match_mask > 0, 1.0 - giou, 0.0)) / num_boxes

    return {
        "loss_ce": loss_ce,
        "class_error": class_error,
        "cardinality_error": card_err,
        "loss_bbox": loss_bbox,
        "loss_giou": loss_giou,
    }


if __name__ == "__main__":
    key = jax.random.PRNGKey(0)
    B, Q, num_classes = 2, 8, 4
    V = num_classes + 1
    eos_coef = 0.1

    k1, k2, k3, k4, k5, k6 = jax.random.split(key, 6)

    # synthetic model outputs
    pred_logits = jax.random.normal(k1, (B, Q, V), jnp.float32)
    pred_boxes = jax.nn.sigmoid(jax.random.normal(k2, (B, Q, 4), jnp.float32))

    # synthetic targets: batch 0 has 3 gt boxes, batch 1 has 2
    tgt_labels = [
        jax.random.randint(k3, (3,), 0, num_classes, jnp.int32),
        jax.random.randint(k4, (2,), 0, num_classes, jnp.int32),
    ]

    def make_boxes(k, n):
        cxcy = jax.random.uniform(k, (n, 2), minval=0.25, maxval=0.75)
        wh = jax.random.uniform(jax.random.fold_in(k, 1), (n, 2),
                                minval=0.05, maxval=0.3)
        return jnp.concatenate([cxcy, wh], axis=1).astype(jnp.float32)

    tgt_boxes_list = [make_boxes(k5, 3), make_boxes(k6, 2)]

    # TODO(synk): the Hungarian matcher (scipy linear_sum_assignment) has no clean
    # Pallas equivalent; fixed deterministic (src query, tgt box) indices stand in
    # for `self.matcher(outputs, targets)`.
    indices = [
        (jnp.array([1, 3, 5], jnp.int32), jnp.array([0, 1, 2], jnp.int32)),
        (jnp.array([0, 2], jnp.int32), jnp.array([0, 1], jnp.int32)),
    ]

    # glue: scatter matched targets into dense [B, Q, ...] tensors
    target_classes = jnp.full((B, Q), num_classes, jnp.int32)   # no-object fill
    match_mask = jnp.zeros((B, Q), jnp.float32)
    tgt_boxes_full = jnp.zeros((B, Q, 4), jnp.float32)
    for b, (src, tgt) in enumerate(indices):
        target_classes = target_classes.at[b, src].set(tgt_labels[b][tgt])
        match_mask = match_mask.at[b, src].set(1.0)
        tgt_boxes_full = tgt_boxes_full.at[b, src].set(tgt_boxes_list[b][tgt])

    # TODO(synk): distributed all_reduce of num_boxes omitted (single host).
    total_boxes = float(sum(int(l.shape[0]) for l in tgt_labels))
    num_boxes = max(total_boxes, 1.0)
    tgt_lengths = jnp.array([float(l.shape[0]) for l in tgt_labels], jnp.float32)

    losses = set_criterion(pred_logits, pred_boxes, target_classes, match_mask,
                           tgt_boxes_full, tgt_lengths, eos_coef, num_boxes)
    losses = jax.block_until_ready(losses)

    ref = _reference(pred_logits, pred_boxes, target_classes, match_mask,
                     tgt_boxes_full, tgt_lengths, eos_coef, num_boxes)
    for name in losses:
        np.testing.assert_allclose(np.asarray(losses[name]), np.asarray(ref[name]),
                                   rtol=5e-4, atol=5e-4)

    print("KERNEL_OK")
</pallas_src>

<mosaic_0001>
module attributes {stable_mosaic.version = 11 : i64} {
  func.func @_set_criterion_kernel(%arg0: i32, %arg1: memref<2x8x5xf32, #tpu.memory_space<vmem>>, %arg2: memref<2x8x16xf32, #tpu.memory_space<vmem>>, %arg3: memref<2x1x1xf32, #tpu.memory_space<vmem>>, %arg4: memref<8xf32, #tpu.memory_space<smem>>, %arg5: memref<8xf32, #tpu.memory_space<smem>>, %arg6: memref<2x1x1xf32, #tpu.memory_space<vmem>>) attributes {dimension_semantics = [#tpu.dimension_semantics<arbitrary>], iteration_bounds = array<i64: 1>, scalar_prefetch = 0 : i64, scratch_operands = 2 : i64, tpu.core_type = #tpu.core_type<tc>, window_params = [{transform_indices = @transform_0, window_bounds = array<i64: 2, 8, 5>}, {transform_indices = @transform_1, window_bounds = array<i64: 2, 8, 16>}, {pipeline_mode = #tpu.pipeline_mode<synchronous>, transform_indices = @transform_2, window_bounds = array<i64: 2, 1, 1>}, {transform_indices = @transform_3, window_bounds = array<i64: 8>}]} {
    %c0_i32 = arith.constant 0 : i32
    %0 = arith.cmpi eq, %arg0, %c0_i32 : i32
    %1 = arith.extui %0 : i1 to i32
    %c0_i32_0 = arith.constant 0 : i32
    %2 = arith.cmpi ne, %1, %c0_i32_0 : i32
    scf.if %2 {
      %cst_58 = arith.constant 0.000000e+00 : f32
      %c0_59 = arith.constant 0 : index
      %188 = memref.load %arg5[%c0_59] : memref<8xf32, #tpu.memory_space<smem>>
      memref.store %cst_58, %arg5[%c0_59] : memref<8xf32, #tpu.memory_space<smem>>
      %cst_60 = arith.constant 0.000000e+00 : f32
      %c1_61 = arith.constant 1 : index
      %189 = memref.load %arg5[%c1_61] : memref<8xf32, #tpu.memory_space<smem>>
      memref.store %cst_60, %arg5[%c1_61] : memref<8xf32, #tpu.memory_space<smem>>
      %cst_62 = arith.constant 0.000000e+00 : f32
      %c2_63 = arith.constant 2 : index
      %190 = memref.load %arg5[%c2_63] : memref<8xf32, #tpu.memory_space<smem>>
      memref.store %cst_62, %arg5[%c2_63] : memref<8xf32, #tpu.memory_space<smem>>
      %cst_64 = arith.constant 0.000000e+00 : f32
      %c3_65 = arith.constant 3 : index
      %191 = memref.load %arg5[%c3_65] : memref<8xf32, #tpu.memory_space<smem>>
      memref.store %cst_64, %arg5[%c3_65] : memref<8xf32, #tpu.memory_space<smem>>
      %cst_66 = arith.constant 0.000000e+00 : f32
      %c4_67 = arith.constant 4 : index
      %192 = memref.load %arg5[%c4_67] : memref<8xf32, #tpu.memory_space<smem>>
      memref.store %cst_66, %arg5[%c4_67] : memref<8xf32, #tpu.memory_space<smem>>
      %cst_68 = arith.constant 0.000000e+00 : f32
      %c5_69 = arith.constant 5 : index
      %193 = memref.load %arg5[%c5_69] : memref<8xf32, #tpu.memory_space<smem>>
      memref.store %cst_68, %arg5[%c5_69] : memref<8xf32, #tpu.memory_space<smem>>
      %cst_70 = arith.constant 0.000000e+00 : f32
      %c6 = arith.constant 6 : index
      %194 = memref.load %arg5[%c6] : memref<8xf32, #tpu.memory_space<smem>>
      memref.store %cst_70, %arg5[%c6] : memref<8xf32, #tpu.memory_space<smem>>
      %cst_71 = arith.constant 0.000000e+00 : f32
      %c7 = arith.constant 7 : index
      %195 = memref.load %arg5[%c7] : memref<8xf32, #tpu.memory_space<smem>>
      memref.store %cst_71, %arg5[%c7] : memref<8xf32, #tpu.memory_space<smem>>
      %cst_72 = arith.constant 0.000000e+00 : f32
      %196 = vector.broadcast %cst_72 : f32 to vector<2x1x1xf32>
      %c0_73 = arith.constant 0 : index
      %c0_74 = arith.constant 0 : index
      %c0_75 = arith.constant 0 : index
      %197 = vector.load %arg6[%c0_73, %c0_74, %c0_75] : memref<2x1x1xf32, #tpu.memory_space<vmem>>, vector<2x1x1xf32>
      tpu.vector_store %arg6[%c0_73, %c0_74, %c0_75], %196 {strides = array<i32>} : memref<2x1x1xf32, #tpu.memory_space<vmem>>, vector<2x1x1xf32>,
    } else {
    }
    %c0 = arith.constant 0 : index
    %c0_1 = arith.constant 0 : index
    %c0_2 = arith.constant 0 : index
    %3 = vector.load %arg1[%c0, %c0_1, %c0_2] : memref<2x8x5xf32, #tpu.memory_space<vmem>>, vector<2x8x5xf32>
    %c0_3 = arith.constant 0 : index
    %c0_4 = arith.constant 0 : index
    %c0_5 = arith.constant 0 : index
    %4 = vector.load %arg2[%c0_3, %c0_4, %c0_5] : memref<2x8x16xf32, #tpu.memory_space<vmem>>, vector<2x8x16xf32>
    %5 = vector.extract_strided_slice %4 {offsets = [0, 0, 0], sizes = [2, 8, 1], strides = [1, 1, 1]} : vector<2x8x16xf32> to vector<2x8x1xf32>
    %6 = arith.fptosi %5 : vector<2x8x1xf32> to vector<2x8x1xi32>
    %7 = vector.extract_strided_slice %4 {offsets = [0, 0, 1], sizes = [2, 8, 1], strides = [1, 1, 1]} : vector<2x8x16xf32> to vector<2x8x1xf32>
    %8 = vector.extract_strided_slice %4 {offsets = [0, 0, 2], sizes = [2, 8, 1], strides = [1, 1, 1]} : vector<2x8x16xf32> to vector<2x8x1xf32>
    %9 = vector.extract_strided_slice %4 {offsets = [0, 0, 3], sizes = [2, 8, 1], strides = [1, 1, 1]} : vector<2x8x16xf32> to vector<2x8x1xf32>
    %10 = vector.extract_strided_slice %4 {offsets = [0, 0, 4], sizes = [2, 8, 4], strides = [1, 1, 1]} : vector<2x8x16xf32> to vector<2x8x4xf32>
    %11 = vector.extract_strided_slice %4 {offsets = [0, 0, 8], sizes = [2, 8, 4], strides = [1, 1, 1]} : vector<2x8x16xf32> to vector<2x8x4xf32>
    %12 = tpu.iota {dimensions = array<i32: 2>} : vector<2x8x5xi32>
    %c4_i32 = arith.constant 4 : i32
    %13 = vector.broadcast %c4_i32 : i32 to vector<2x8x5xi32>
    %14 = arith.cmpi slt, %12, %13 : vector<2x8x5xi32>
    %cst = arith.constant -1.000000e+30 : f32
    %15 = vector.broadcast %cst : f32 to vector<2x8x5xf32>
    %16 = arith.select %14, %3, %15 : vector<2x8x5xi1>, vector<2x8x5xf32>
    %cst_6 = arith.constant dense<0xFF800000> : vector<2x8xf32>
    %17 = vector.multi_reduction <maximumf>, %16, %cst_6 [2] : vector<2x8x5xf32> to vector<2x8xf32>
    %18 = vector.shape_cast %17 : vector<2x8xf32> to vector<2x8x1xf32>
    %c4_i32_7 = arith.constant 4 : i32
    %19 = vector.broadcast %c4_i32_7 : i32 to vector<2x8x5xi32>
    %20 = arith.cmpi eq, %12, %19 : vector<2x8x5xi32>
    %cst_8 = arith.constant 0.000000e+00 : f32
    %21 = vector.broadcast %cst_8 : f32 to vector<2x8x5xf32>
    %22 = arith.select %20, %3, %21 : vector<2x8x5xi1>, vector<2x8x5xf32>
    %cst_9 = arith.constant dense<0.000000e+00> : vector<2x8xf32>
    %23 = vector.multi_reduction <add>, %22, %cst_9 [2] : vector<2x8x5xf32> to vector<2x8xf32>
    %24 = vector.shape_cast %23 : vector<2x8xf32> to vector<2x8x1xf32>
    %25 = arith.maximumf %18, %24 : vector<2x8x1xf32>
    %26 = vector.broadcast %25 : vector<2x8x1xf32> to vector<2x8x5xf32>
    %27 = arith.subf %3, %26 : vector<2x8x5xf32>
    %28 = math.exp %27 : vector<2x8x5xf32>
    %cst_10 = arith.constant dense<0.000000e+00> : vector<2x8xf32>
    %29 = vector.multi_reduction <add>, %28, %cst_10 [2] : vector<2x8x5xf32> to vector<2x8xf32>
    %30 = vector.shape_cast %29 : vector<2x8xf32> to vector<2x8x1xf32>
    %31 = math.log %30 : vector<2x8x1xf32>
    %32 = arith.addf %25, %31 : vector<2x8x1xf32>
    %33 = vector.broadcast %6 : vector<2x8x1xi32> to vector<2x8x5xi32>
    %34 = arith.cmpi eq, %12, %33 : vector<2x8x5xi32>
    %cst_11 = arith.constant 0.000000e+00 : f32
    %35 = vector.broadcast %cst_11 : f32 to vector<2x8x5xf32>
    %36 = arith.select %34, %3, %35 : vector<2x8x5xi1>, vector<2x8x5xf32>
    %cst_12 = arith.constant dense<0.000000e+00> : vector<2x8xf32>
    %37 = vector.multi_reduction <add>, %36, %cst_12 [2] : vector<2x8x5xf32> to vector<2x8xf32>
    %38 = vector.shape_cast %37 : vector<2x8xf32> to vector<2x8x1xf32>
    %39 = arith.subf %38, %32 : vector<2x8x1xf32>
    %c0_13 = arith.constant 0 : index
    %40 = memref.load %arg5[%c0_13] : memref<8xf32, #tpu.memory_space<smem>>
    %cst_14 = arith.constant 0.000000e+00 : f32
    %41 = vector.broadcast %cst_14 : f32 to vector<2x8x1xf32>
    %42 = arith.subf %41, %39 : vector<2x8x1xf32>
    %43 = arith.mulf %8, %42 : vector<2x8x1xf32>
    %44 = vector.shape_cast %43 : vector<2x8x1xf32> to vector<1x2x8x1xf32>
    %cst_15 = arith.constant dense<0.000000e+00> : vector<1xf32>
    %45 = vector.multi_reduction <add>, %44, %cst_15 [1, 2, 3] : vector<1x2x8x1xf32> to vector<1xf32>
    %46 = vector.shape_cast %45 : vector<1xf32> to vector<1x1x1x1xf32>
    %47 = vector.extract %46[0, 0, 0, 0] : f32 from vector<1x1x1x1xf32>
    %48 = arith.addf %40, %47 : f32
    %c0_16 = arith.constant 0 : index
    %49 = memref.load %arg5[%c0_16] : memref<8xf32, #tpu.memory_space<smem>>
    memref.store %48, %arg5[%c0_16] : memref<8xf32, #tpu.memory_space<smem>>
    %c1 = arith.constant 1 : index
    %50 = memref.load %arg5[%c1] : memref<8xf32, #tpu.memory_space<smem>>
    %51 = vector.shape_cast %8 : vector<2x8x1xf32> to vector<1x2x8x1xf32>
    %cst_17 = arith.constant dense<0.000000e+00> : vector<1xf32>
    %52 = vector.multi_reduction <add>, %51, %cst_17 [1, 2, 3] : vector<1x2x8x1xf32> to vector<1xf32>
    %53 = vector.shape_cast %52 : vector<1xf32> to vector<1x1x1x1xf32>
    %54 = vector.extract %53[0, 0, 0, 0] : f32 from vector<1x1x1x1xf32>
    %55 = arith.addf %50, %54 : f32
    %c1_18 = arith.constant 1 : index
    %56 = memref.load %arg5[%c1_18] : memref<8xf32, #tpu.memory_space<smem>>
    memref.store %55, %arg5[%c1_18] : memref<8xf32, #tpu.memory_space<smem>>
    %57 = vector.broadcast %6 : vector<2x8x1xi32> to vector<2x8x5xi32>
    %58 = arith.cmpi slt, %12, %57 : vector<2x8x5xi32>
    %cst_19 = arith.constant -1.000000e+30 : f32
    %59 = vector.broadcast %cst_19 : f32 to vector<2x8x5xf32>
    %60 = arith.select %58, %3, %59 : vector<2x8x5xi1>, vector<2x8x5xf32>
    %cst_20 = arith.constant dense<0xFF800000> : vector<2x8xf32>
    %61 = vector.multi_reduction <maximumf>, %60, %cst_20 [2] : vector<2x8x5xf32> to vector<2x8xf32>
    %62 = vector.shape_cast %61 : vector<2x8xf32> to vector<2x8x1xf32>
    %63 = arith.cmpf oge, %38, %25 : vector<2x8x1xf32>
    %64 = arith.cmpf ogt, %38, %62 : vector<2x8x1xf32>
    %65 = arith.andi %63, %64 : vector<2x8x1xi1>
    %cst_21 = arith.constant 1.000000e+00 : f32
    %cst_22 = arith.constant 0.000000e+00 : f32
    %66 = vector.broadcast %cst_21 : f32 to vector<2x8x1xf32>
    %67 = vector.broadcast %cst_22 : f32 to vector<2x8x1xf32>
    %68 = arith.select %65, %66, %67 : vector<2x8x1xi1>, vector<2x8x1xf32>
    %69 = arith.mulf %68, %7 : vector<2x8x1xf32>
    %c2 = arith.constant 2 : index
    %70 = memref.load %arg5[%c2] : memref<8xf32, #tpu.memory_space<smem>>
    %71 = vector.shape_cast %69 : vector<2x8x1xf32> to vector<1x2x8x1xf32>
    %cst_23 = arith.constant dense<0.000000e+00> : vector<1xf32>
    %72 = vector.multi_reduction <add>, %71, %cst_23 [1, 2, 3] : vector<1x2x8x1xf32> to vector<1xf32>
    %73 = vector.shape_cast %72 : vector<1xf32> to vector<1x1x1x1xf32>
    %74 = vector.extract %73[0, 0, 0, 0] : f32 from vector<1x1x1x1xf32>
    %75 = arith.addf %70, %74 : f32
    %c2_24 = arith.constant 2 : index
    %76 = memref.load %arg5[%c2_24] : memref<8xf32, #tpu.memory_space<smem>>
    memref.store %75, %arg5[%c2_24] : memref<8xf32, #tpu.memory_space<smem>>
    %c3 = arith.constant 3 : index
    %77 = memref.load %arg5[%c3] : memref<8xf32, #tpu.memory_space<smem>>
    %78 = vector.shape_cast %7 : vector<2x8x1xf32> to vector<1x2x8x1xf32>
    %cst_25 = arith.constant dense<0.000000e+00> : vector<1xf32>
    %79 = vector.multi_reduction <add>, %78, %cst_25 [1, 2, 3] : vector<1x2x8x1xf32> to vector<1xf32>
    %80 = vector.shape_cast %79 : vector<1xf32> to vector<1x1x1x1xf32>
    %81 = vector.extract %80[0, 0, 0, 0] : f32 from vector<1x1x1x1xf32>
    %82 = arith.addf %77, %81 : f32
    %c3_26 = arith.constant 3 : index
    %83 = memref.load %arg5[%c3_26] : memref<8xf32, #tpu.memory_space<smem>>
    memref.store %82, %arg5[%c3_26] : memref<8xf32, #tpu.memory_space<smem>>
    %84 = arith.cmpf oge, %18, %24 : vector<2x8x1xf32>
    %cst_27 = arith.constant 1.000000e+00 : f32
    %cst_28 = arith.constant 0.000000e+00 : f32
    %85 = vector.broadcast %cst_27 : f32 to vector<2x8x1xf32>
    %86 = vector.broadcast %cst_28 : f32 to vector<2x8x1xf32>
    %87 = arith.select %84, %85, %86 : vector<2x8x1xi1>, vector<2x8x1xf32>
    %88 = arith.mulf %87, %9 : vector<2x8x1xf32>
    %c0_29 = arith.constant 0 : index
    %c0_30 = arith.constant 0 : index
    %c0_31 = arith.constant 0 : index
    %89 = vector.load %arg6[%c0_29, %c0_30, %c0_31] : memref<2x1x1xf32, #tpu.memory_space<vmem>>, vector<2x1x1xf32>
    %cst_32 = arith.constant dense<0.000000e+00> : vector<2x1xf32>
    %90 = vector.multi_reduction <add>, %88, %cst_32 [1] : vector<2x8x1xf32> to vector<2x1xf32>
    %91 = vector.shape_cast %90 : vector<2x1xf32> to vector<2x1x1xf32>
    %92 = arith.addf %89, %91 : vector<2x1x1xf32>
    %c0_33 = arith.constant 0 : index
    %c0_34 = arith.constant 0 : index
    %c0_35 = arith.constant 0 : index
    %93 = vector.load %arg6[%c0_33, %c0_34, %c0_35] : memref<2x1x1xf32, #tpu.memory_space<vmem>>, vector<2x1x1xf32>
    tpu.vector_store %arg6[%c0_33, %c0_34, %c0_35], %92 {strides = array<i32>} : memref<2x1x1xf32, #tpu.memory_space<vmem>>, vector<2x1x1xf32>,
    %94 = arith.subf %10, %11 : vector<2x8x4xf32>
    %95 = math.absf %94 : vector<2x8x4xf32>
    %cst_36 = arith.constant dense<0.000000e+00> : vector<2x8xf32>
    %96 = vector.multi_reduction <add>, %95, %cst_36 [2] : vector<2x8x4xf32> to vector<2x8xf32>
    %97 = vector.shape_cast %96 : vector<2x8xf32> to vector<2x8x1xf32>
    %98 = arith.mulf %97, %7 : vector<2x8x1xf32>
    %c4 = arith.constant 4 : index
    %99 = memref.load %arg5[%c4] : memref<8xf32, #tpu.memory_space<smem>>
    %100 = vector.shape_cast %98 : vector<2x8x1xf32> to vector<1x2x8x1xf32>
    %cst_37 = arith.constant dense<0.000000e+00> : vector<1xf32>
    %101 = vector.multi_reduction <add>, %100, %cst_37 [1, 2, 3] : vector<1x2x8x1xf32> to vector<1xf32>
    %102 = vector.shape_cast %101 : vector<1xf32> to vector<1x1x1x1xf32>
    %103 = vector.extract %102[0, 0, 0, 0] : f32 from vector<1x1x1x1xf32>
    %104 = arith.addf %99, %103 : f32
    %c4_38 = arith.constant 4 : index
    %105 = memref.load %arg5[%c4_38] : memref<8xf32, #tpu.memory_space<smem>>
    memref.store %104, %arg5[%c4_38] : memref<8xf32, #tpu.memory_space<smem>>
    %106 = vector.extract_strided_slice %10 {offsets = [0, 0, 0], sizes = [2, 8, 1], strides = [1, 1, 1]} : vector<2x8x4xf32> to vector<2x8x1xf32>
    %107 = vector.extract_strided_slice %10 {offsets = [0, 0, 1], sizes = [2, 8, 1], strides = [1, 1, 1]} : vector<2x8x4xf32> to vector<2x8x1xf32>
    %108 = vector.extract_strided_slice %10 {offsets = [0, 0, 2], sizes = [2, 8, 1], strides = [1, 1, 1]} : vector<2x8x4xf32> to vector<2x8x1xf32>
    %109 = vector.extract_strided_slice %10 {offsets = [0, 0, 3], sizes = [2, 8, 1], strides = [1, 1, 1]} : vector<2x8x4xf32> to vector<2x8x1xf32>
    %cst_39 = arith.constant 5.000000e-01 : f32
    %110 = vector.broadcast %cst_39 : f32 to vector<2x8x1xf32>
    %111 = arith.mulf %110, %108 : vector<2x8x1xf32>
    %112 = arith.subf %106, %111 : vector<2x8x1xf32>
    %cst_40 = arith.constant 5.000000e-01 : f32
    %113 = vector.broadcast %cst_40 : f32 to vector<2x8x1xf32>
    %114 = arith.mulf %113, %109 : vector<2x8x1xf32>
    %115 = arith.subf %107, %114 : vector<2x8x1xf32>
    %cst_41 = arith.constant 5.000000e-01 : f32
    %116 = vector.broadcast %cst_41 : f32 to vector<2x8x1xf32>
    %117 = arith.mulf %116, %108 : vector<2x8x1xf32>
    %118 = arith.addf %106, %117 : vector<2x8x1xf32>
    %cst_42 = arith.constant 5.000000e-01 : f32
    %119 = vector.broadcast %cst_42 : f32 to vector<2x8x1xf32>
    %120 = arith.mulf %119, %109 : vector<2x8x1xf32>
    %121 = arith.addf %107, %120 : vector<2x8x1xf32>
    %122 = vector.extract_strided_slice %11 {offsets = [0, 0, 0], sizes = [2, 8, 1], strides = [1, 1, 1]} : vector<2x8x4xf32> to vector<2x8x1xf32>
    %123 = vector.extract_strided_slice %11 {offsets = [0, 0, 1], sizes = [2, 8, 1], strides = [1, 1, 1]} : vector<2x8x4xf32> to vector<2x8x1xf32>
    %124 = vector.extract_strided_slice %11 {offsets = [0, 0, 2], sizes = [2, 8, 1], strides = [1, 1, 1]} : vector<2x8x4xf32> to vector<2x8x1xf32>
    %125 = vector.extract_strided_slice %11 {offsets = [0, 0, 3], sizes = [2, 8, 1], strides = [1, 1, 1]} : vector<2x8x4xf32> to vector<2x8x1xf32>
    %cst_43 = arith.constant 5.000000e-01 : f32
    %126 = vector.broadcast %cst_43 : f32 to vector<2x8x1xf32>
    %127 = arith.mulf %126, %124 : vector<2x8x1xf32>
    %128 = arith.subf %122, %127 : vector<2x8x1xf32>
    %cst_44 = arith.constant 5.000000e-01 : f32
    %129 = vector.broadcast %cst_44 : f32 to vector<2x8x1xf32>
    %130 = arith.mulf %129, %125 : vector<2x8x1xf32>
    %131 = arith.subf %123, %130 : vector<2x8x1xf32>
    %cst_45 = arith.constant 5.000000e-01 : f32
    %132 = vector.broadcast %cst_45 : f32 to vector<2x8x1xf32>
    %133 = arith.mulf %132, %124 : vector<2x8x1xf32>
    %134 = arith.addf %122, %133 : vector<2x8x1xf32>
    %cst_46 = arith.constant 5.000000e-01 : f32
    %135 = vector.broadcast %cst_46 : f32 to vector<2x8x1xf32>
    %136 = arith.mulf %135, %125 : vector<2x8x1xf32>
    %137 = arith.addf %123, %136 : vector<2x8x1xf32>
    %138 = arith.minimumf %118, %134 : vector<2x8x1xf32>
    %139 = arith.maximumf %112, %128 : vector<2x8x1xf32>
    %140 = arith.subf %138, %139 : vector<2x8x1xf32>
    %cst_47 = arith.constant 0.000000e+00 : f32
    %141 = vector.broadcast %cst_47 : f32 to vector<2x8x1xf32>
    %142 = arith.maximumf %140, %141 : vector<2x8x1xf32>
    %143 = arith.minimumf %121, %137 : vector<2x8x1xf32>
    %144 = arith.maximumf %115, %131 : vector<2x8x1xf32>
    %145 = arith.subf %143, %144 : vector<2x8x1xf32>
    %cst_48 = arith.constant 0.000000e+00 : f32
    %146 = vector.broadcast %cst_48 : f32 to vector<2x8x1xf32>
    %147 = arith.maximumf %145, %146 : vector<2x8x1xf32>
    %148 = arith.mulf %142, %147 : vector<2x8x1xf32>
    %149 = arith.subf %118, %112 : vector<2x8x1xf32>
    %150 = arith.subf %121, %115 : vector<2x8x1xf32>
    %151 = arith.mulf %149, %150 : vector<2x8x1xf32>
    %152 = arith.subf %134, %128 : vector<2x8x1xf32>
    %153 = arith.subf %137, %131 : vector<2x8x1xf32>
    %154 = arith.mulf %152, %153 : vector<2x8x1xf32>
    %155 = arith.addf %151, %154 : vector<2x8x1xf32>
    %156 = arith.subf %155, %148 : vector<2x8x1xf32>
    %cst_49 = arith.constant 1.000000e-07 : f32
    %157 = vector.broadcast %cst_49 : f32 to vector<2x8x1xf32>
    %158 = arith.maximumf %156, %157 : vector<2x8x1xf32>
    %159 = arith.divf %148, %158 : vector<2x8x1xf32>
    %160 = arith.maximumf %118, %134 : vector<2x8x1xf32>
    %161 = arith.minimumf %112, %128 : vector<2x8x1xf32>
    %162 = arith.subf %160, %161 : vector<2x8x1xf32>
    %163 = arith.maximumf %121, %137 : vector<2x8x1xf32>
    %164 = arith.minimumf %115, %131 : vector<2x8x1xf32>
    %165 = arith.subf %163, %164 : vector<2x8x1xf32>
    %166 = arith.mulf %162, %165 : vector<2x8x1xf32>
    %167 = arith.subf %166, %156 : vector<2x8x1xf32>
    %cst_50 = arith.constant 1.000000e-07 : f32
    %168 = vector.broadcast %cst_50 : f32 to vector<2x8x1xf32>
    %169 = arith.maximumf %166, %168 : vector<2x8x1xf32>
    %170 = arith.divf %167, %169 : vector<2x8x1xf32>
    %171 = arith.subf %159, %170 : vector<2x8x1xf32>
    %c5 = arith.constant 5 : index
    %172 = memref.load %arg5[%c5] : memref<8xf32, #tpu.memory_space<smem>>
    %cst_51 = arith.constant 0.000000e+00 : f32
    %173 = vector.broadcast %cst_51 : f32 to vector<2x8x1xf32>
    %174 = arith.cmpf ogt, %7, %173 : vector<2x8x1xf32>
    %cst_52 = arith.constant 1.000000e+00 : f32
    %175 = vector.broadcast %cst_52 : f32 to vector<2x8x1xf32>
    %176 = arith.subf %175, %171 : vector<2x8x1xf32>
    %cst_53 = arith.constant 0.000000e+00 : f32
    %177 = vector.broadcast %cst_53 : f32 to vector<2x8x1xf32>
    %178 = arith.select %174, %176, %177 : vector<2x8x1xi1>, vector<2x8x1xf32>
    %179 = vector.shape_cast %178 : vector<2x8x1xf32> to vector<1x2x8x1xf32>
    %cst_54 = arith.constant dense<0.000000e+00> : vector<1xf32>
    %180 = vector.multi_reduction <add>, %179, %cst_54 [1, 2, 3] : vector<1x2x8x1xf32> to vector<1xf32>
    %181 = vector.shape_cast %180 : vector<1xf32> to vector<1x1x1x1xf32>
    %182 = vector.extract %181[0, 0, 0, 0] : f32 from vector<1x1x1x1xf32>
    %183 = arith.addf %172, %182 : f32
    %c5_55 = arith.constant 5 : index
    %184 = memref.load %arg5[%c5_55] : memref<8xf32, #tpu.memory_space<smem>>
    memref.store %183, %arg5[%c5_55] : memref<8xf32, #tpu.memory_space<smem>>
    %c0_i32_56 = arith.constant 0 : i32
    %185 = arith.cmpi eq, %arg0, %c0_i32_56 : i32
    %186 = arith.extui %185 : i1 to i32
    %c0_i32_57 = arith.constant 0 : i32
    %187 = arith.cmpi ne, %186, %c0_i32_57 : i32
    scf.if %187 {
      %c0_58 = arith.constant 0 : index
      %188 = memref.load %arg5[%c0_58] : memref<8xf32, #tpu.memory_space<smem>>
      %c1_59 = arith.constant 1 : index
      %189 = memref.load %arg5[%c1_59] : memref<8xf32, #tpu.memory_space<smem>>
      %cst_60 = arith.constant 9.99999997E-7 : f32
      %190 = arith.maximumf %189, %cst_60 : f32
      %191 = arith.divf %188, %190 : f32
      %c2_61 = arith.constant 2 : index
      %192 = memref.load %arg5[%c2_61] : memref<8xf32, #tpu.memory_space<smem>>
      %cst_62 = arith.constant 1.000000e+02 : f32
      %193 = arith.mulf %cst_62, %192 : f32
      %c3_63 = arith.constant 3 : index
      %194 = memref.load %arg5[%c3_63] : memref<8xf32, #tpu.memory_space<smem>>
      %cst_64 = arith.constant 1.000000e+00 : f32
      %195 = arith.maximumf %194, %cst_64 : f32
      %196 = arith.divf %193, %195 : f32
      %cst_65 = arith.constant 1.000000e+02 : f32
      %197 = arith.subf %cst_65, %196 : f32
      %c0_66 = arith.constant 0 : index
      %c0_67 = arith.constant 0 : index
      %c0_68 = arith.constant 0 : index
      %198 = vector.load %arg6[%c0_66, %c0_67, %c0_68] : memref<2x1x1xf32, #tpu.memory_space<vmem>>, vector<2x1x1xf32>
      %c0_69 = arith.constant 0 : index
      %c0_70 = arith.constant 0 : index
      %c0_71 = arith.constant 0 : index
      %199 = vector.load %arg3[%c0_69, %c0_70, %c0_71] : memref<2x1x1xf32, #tpu.memory_space<vmem>>, vector<2x1x1xf32>
      %200 = arith.subf %198, %199 : vector<2x1x1xf32>
      %201 = math.absf %200 : vector<2x1x1xf32>
      %202 = vector.shape_cast %201 : vector<2x1x1xf32> to vector<1x2x1x1xf32>
      %cst_72 = arith.constant dense<0.000000e+00> : vector<1xf32>
      %203 = vector.multi_reduction <add>, %202, %cst_72 [1, 2, 3] : vector<1x2x1x1xf32> to vector<1xf32>
      %204 = vector.shape_cast %203 : vector<1xf32> to vector<1x1x1x1xf32>
      %205 = vector.extract %204[0, 0, 0, 0] : f32 from vector<1x1x1x1xf32>
      %cst_73 = arith.constant 2.000000e+00 : f32
      %206 = arith.divf %205, %cst_73 : f32
      %c0_74 = arith.constant 0 : index
      %207 = memref.load %arg4[%c0_74] : memref<8xf32, #tpu.memory_space<smem>>
      memref.store %191, %arg4[%c0_74] : memref<8xf32, #tpu.memory_space<smem>>
      %c1_75 = arith.constant 1 : index
      %208 = memref.load %arg4[%c1_75] : memref<8xf32, #tpu.memory_space<smem>>
      memref.store %197, %arg4[%c1_75] : memref<8xf32, #tpu.memory_space<smem>>
      %c2_76 = arith.constant 2 : index
      %209 = memref.load %arg4[%c2_76] : memref<8xf32, #tpu.memory_space<smem>>
      memref.store %206, %arg4[%c2_76] : memref<8xf32, #tpu.memory_space<smem>>
      %c4_77 = arith.constant 4 : index
      %210 = memref.load %arg5[%c4_77] : memref<8xf32, #tpu.memory_space<smem>>
      %cst_78 = arith.constant 5.000000e+00 : f32
      %211 = arith.divf %210, %cst_78 : f32
      %c3_79 = arith.constant 3 : index
      %212 = memref.load %arg4[%c3_79] : memref<8xf32, #tpu.memory_space<smem>>
      memref.store %211, %arg4[%c3_79] : memref<8xf32, #tpu.memory_space<smem>>
      %c5_80 = arith.constant 5 : index
      %213 = memref.load %arg5[%c5_80] : memref<8xf32, #tpu.memory_space<smem>>
      %cst_81 = arith.constant 5.000000e+00 : f32
      %214 = arith.divf %213, %cst_81 : f32
      %c4_82 = arith.constant 4 : index
      %215 = memref.load %arg4[%c4_82] : memref<8xf32, #tpu.memory_space<smem>>
      memref.store %214, %arg4[%c4_82] : memref<8xf32, #tpu.memory_space<smem>>
      %cst_83 = arith.constant 0.000000e+00 : f32
      %c5_84 = arith.constant 5 : index
      %216 = memref.load %arg4[%c5_84] : memref<8xf32, #tpu.memory_space<smem>>
      memref.store %cst_83, %arg4[%c5_84] : memref<8xf32, #tpu.memory_space<smem>>
      %cst_85 = arith.constant 0.000000e+00 : f32
      %c6 = arith.constant 6 : index
      %217 = memref.load %arg4[%c6] : memref<8xf32, #tpu.memory_space<smem>>
      memref.store %cst_85, %arg4[%c6] : memref<8xf32, #tpu.memory_space<smem>>
      %cst_86 = arith.constant 0.000000e+00 : f32
      %c7 = arith.constant 7 : index
      %218 = memref.load %arg4[%c7] : memref<8xf32, #tpu.memory_space<smem>>
      memref.store %cst_86, %arg4[%c7] : memref<8xf32, #tpu.memory_space<smem>>
    } else {
    }
    return
  }
  func.func @transform_0(%arg0: i32) -> (i32, i32, i32) {
    %c0_i32 = arith.constant 0 : i32
    %c0_i32_0 = arith.constant 0 : i32
    %c0_i32_1 = arith.constant 0 : i32
    return %c0_i32, %arg0, %c0_i32_0 : i32, i32, i32
  }
  func.func @transform_1(%arg0: i32) -> (i32, i32, i32) {
    %c0_i32 = arith.constant 0 : i32
    %c0_i32_0 = arith.constant 0 : i32
    %c0_i32_1 = arith.constant 0 : i32
    return %c0_i32, %arg0, %c0_i32_0 : i32, i32, i32
  }
  func.func @transform_2(%arg0: i32) -> (i32, i32, i32) {
    %c0_i32 = arith.constant 0 : i32
    %c0_i32_0 = arith.constant 0 : i32
    %c0_i32_1 = arith.constant 0 : i32
    %c0_i32_2 = arith.constant 0 : i32
    return %c0_i32, %c0_i32_0, %c0_i32_1 : i32, i32, i32
  }
  func.func @transform_3(%arg0: i32) -> i32 {
    %c0_i32 = arith.constant 0 : i32
    %c0_i32_0 = arith.constant 0 : i32
    return %c0_i32 : i32
  }
}

</mosaic_0001>

<bundles_post_ra>
// kernel: tpu_custom_call.1
= control target key start
LH: loop header
LB: loop body
LE: loop exit
PB: predicated region body
PF: predicated region fallthrough
CT: control target
= control target key end

     0   :  { %v44_v1 = vlaneseq  ;;  %v722_v3 = vmov 0   ;;  %s1065_s0 = inlined_call_operand.vmem [shape: f32[2,8,5], index: 0, kind: input, shape index: {}]   ;;  %s1066_s1 = inlined_call_operand.vmem [shape: f32[2,8,16], index: 1, kind: input, shape index: {}]   ;;  %s1067_s2 = inlined_call_operand.vmem [shape: f32[2,1,1], index: 2, kind: input, shape index: {}]   ;;  %s1068_s3 = inlined_call_operand.hbm [shape: f32[8], index: 3, kind: output, shape index: {}]  }
   0x1   :  { %v757_v0 = vld [vmem:[%s1066_s1] sm:$0xff]  ;;  %682 = vset.pattern.permute.xlu0 %v722_v3  ;;  %683 = vset.pattern.permute.xlu1 %v722_v3 }
   0x2   :  { %v309_v2 = vmul.f32 0.5, %v757_v0 }
   0x3   :  { %8 = vsyncpa [#allocation5], 0  ;;  %v763_v4 = vld [vmem:[%s1065_s0] sm:$0xff]  ;;  %v765_v5 = vand.u32 127, %v44_v1  ;;  %s723_s16 = smov 126   ;;  %vm49_vm0 = vcmask 39936   ;;  %v639_v13 = vceil.f32 %v757_v0  ;;  %v640_v14 = vfloor.f32 %v757_v0 }
   0x4   :  { %313 = vrot.lane.b32.xlu0 %v309_v2, %s723_s16  ;;  %v771_v6 = vld [vmem:[%s1066_s1 + $0x8] sm:$0xff]  ;;  %vm638_vm3 = vcmp.lt.s32.totalorder %v757_v0, 0  ;;  %s725_s1 = smov 127   ;;  %vm116_vm11 = vcmask 7168   ;;  %vm276_vm12 = vcmask 31744   ;;  %s727_s21 = smov 125  }
   0x5   :  { %vm56_vm1 = vcmp.eq.s32.totalorder %v765_v5, 4  ;;  %vm46_vm2 = vcmp.lt.s32.totalorder %v765_v5, 4  ;;  %v782_v11 = vld [vmem:[%s1065_s0 + $0x8] sm:$0xff]  ;;  %v310_v12 = vmul.f32 0.5, %v771_v6  ;;  %v641_v17 = vsel %vm638_vm3, %v639_v13, %v640_v14  ;;  %s724_s0 = smov 124   ;;  %s730_s5 = smov 1.0  }
   0x6   :  { %v57_v7 = vsel %vm56_vm1, %v763_v4, 0.0  ;;  %v47_v8 = vsel %vm46_vm2, %v763_v4, -1e+30  ;;  %v58_v15 = vsel %vm56_vm1, %v782_v11, 0.0  ;;  %v48_v16 = vsel %vm46_vm2, %v782_v11, -1e+30 }
   0x7   :  { %v59_v9 = vsel %vm49_vm0, %v57_v7, 0.0  ;;  %v50_v10 = vsel %vm49_vm0, %v47_v8, -inf  ;;  %v62_v18 = vsel %vm49_vm0, %v58_v15, 0.0  ;;  %v53_v19 = vsel %vm49_vm0, %v48_v16, -inf  ;;  %s729_s30 = smov 1e-06  }
   0x8   :  { %60 = vadd.xlane.f32.xlu2 %v59_v9  ;;  %51 = vmax.xlane.f32.xlu1 %v50_v10  ;;  %v642_v20 = vcvt.f32.s32 %v641_v17  ;;  %v644_v21 = vceil.f32 %v771_v6  ;;  %v645_v22 = vfloor.f32 %v771_v6  ;;  %vm643_vm4 = vcmp.lt.s32.totalorder %v771_v6, 0  ;;  %s618_s9 = sshll.u32 %s1068_s3, 4  ;;  %s733_s3 = smov [#allocation4]   ;;  %s619_s9 = int_to_ptr.hbm [resolvable:$true] %s618_s9 }
   0xa   :  { %v646_v23 = vsel %vm643_vm4, %v644_v21, %v645_v22 }
   0xb   :  { %v647_v24 = vcvt.f32.s32 %v646_v23 }
   0xc   :  { %315 = vrot.lane.b32.xlu0 %v310_v12, %s723_s16 }
  0x10   :  { %63 = vadd.xlane.f32.xlu2 %v62_v18  ;;  %54 = vmax.xlane.f32.xlu1 %v53_v19 }
  0x14   :  { %86 = vperm.xlu0 %682, %v642_v20  }
  0x1c   :  { %258 = vrot.lane.b32.xlu0 %v757_v0, %s724_s0 }
  0x24   :  { %260 = vrot.lane.b32.xlu0 %v771_v6, %s724_s0 }
  0x28   :  { %135 = vrot.lane.b32.xlu2 %v757_v0, %s723_s16 }
  0x29   :  { %89 = vperm.xlu1 %683, %v647_v24  }
  0x31   :  { %137 = vrot.lane.b32.xlu1 %v771_v6, %s723_s16 }
  0x39   :  { %201 = vrot.lane.b32.xlu1 %v757_v0, %s725_s1 }
  0x76   :  { %v314_v25 = vpop.permute.xlu0 %313 }
  0x77   :  { %v807_v26 = vsub.f32 %v757_v0, %v314_v25  ;;  %v810_v27 = vadd.f32 %v314_v25, %v757_v0 }
  0x79   :  { %325 = vrot.lane.b32.xlu2 %v810_v27, %s724_s0  ;;  %v816_v28 = vsub.f32 %v810_v27, %v807_v26 }
  0x7b   :  { %361 = vrot.lane.b32.xlu1 %v816_v28, %s725_s1  ;;  %v820_v29 = vpop.xlane.xlu2 %60  ;;  %v822_v30 = vpop.xlane.xlu1 %51 }
  0x7c   :  { %vm222_vm5 = vcmp.ge.f32.partialorder %v822_v30, %v820_v29  ;;  %v864_v52 = vmax.f32 %v822_v30, %v820_v29 }
  0x7e   :  { %v316_v31 = vpop.permute.xlu0 %315  ;;  %v67_v54 = vsub.f32 %v763_v4, %v864_v52 }
  0x7f   :  { %v827_v32 = vsub.f32 %v771_v6, %v316_v31  ;;  %v830_v33 = vadd.f32 %v316_v31, %v771_v6 }
  0x80   :  { %v69_v57 = vmul.f32 1.442695, %v67_v54 }
  0x81   :  { %327 = vrot.lane.b32.xlu0 %v830_v33, %s724_s0  ;;  %337 = vrot.lane.b32.xlu2 %v827_v32, %s724_s0  ;;  %v358_v44 = vsub.f32 %v830_v33, %v827_v32 }
  0x83   :  { %v836_v34 = vpop.xlane.xlu2 %63  ;;  %v838_v35 = vpop.xlane.xlu1 %54 }
  0x84   :  { %vm223_vm6 = vcmp.ge.f32.partialorder %v838_v35, %v836_v34  ;;  %v848_v40 = vmax.f32 %v838_v35, %v836_v34 }
  0x86   :  { %v87_v36 = vpop.permute.xlu0 %86  ;;  %v68_v45 = vsub.f32 %v782_v11, %v848_v40 }
  0x87   :  { %vm156_vm7 = vcmp.lt.s32.totalorder %v765_v5, %v87_v36  ;;  %vm91_vm9 = vcmp.eq.s32.totalorder %v765_v5, %v87_v36 }
  0x88   :  { %v71_v46 = vmul.f32 1.442695, %v68_v45  ;;  %v158_v47 = vsel %vm156_vm7, %v763_v4, -1e+30  ;;  %v93_v56 = vsel %vm91_vm9, %v763_v4, 0.0 }
  0x89   :  { %335 = vrot.lane.b32.xlu0 %v807_v26, %s724_s0  ;;  %v160_v48 = vsel %vm49_vm0, %v158_v47, -inf  ;;  %v95_v58 = vsel %vm49_vm0, %v93_v56, 0.0 }
  0x8a   :  { %684 = vpow2.f32 %v71_v46 }
  0x8b   :  { %686 = vpow2.f32 %v69_v57  ;;  %v136_v1 = vpop.permute.xlu2 %135 }
  0x8c   :  { %v141_v2 = vsel %vm116_vm11, %v136_v1, 0.0 }
  0x8e   :  { %v259_v37 = vpop.permute.xlu0 %258 }
  0x8f   :  { %v264_v38 = vsub.f32 %v757_v0, %v259_v37 }
  0x90   :  { %v685_v49 = vpop.eup %684 }
  0x91   :  { %v266_v39 = vand.u32 2147483647, %v264_v38  ;;  %v76_v50 = vsel %vm49_vm0, %v685_v49, 0.0  ;;  %v687_v61 = vpop.eup %686 }
  0x92   :  { %v73_v62 = vsel %vm49_vm0, %v687_v61, 0.0 }
  0x93   :  { %270 = vrot.lane.b32.xlu0 %v266_v39, %s724_s0 }
  0x96   :  { %v261_v41 = vpop.permute.xlu0 %260 }
  0x97   :  { %v265_v42 = vsub.f32 %v771_v6, %v261_v41 }
  0x99   :  { %v267_v43 = vand.u32 2147483647, %v265_v42 }
  0x9b   :  { %363 = vrot.lane.b32.xlu0 %v358_v44, %s725_s1  ;;  %272 = vrot.lane.b32.xlu2 %v267_v43, %s724_s0  ;;  %v90_v51 = vpop.permute.xlu1 %89 }
  0x9c   :  { %vm92_vm8 = vcmp.eq.s32.totalorder %v765_v5, %v90_v51  ;;  %vm157_vm10 = vcmp.lt.s32.totalorder %v765_v5, %v90_v51 }
  0x9d   :  { %v94_v53 = vsel %vm92_vm8, %v782_v11, 0.0  ;;  %v159_v59 = vsel %vm157_vm10, %v782_v11, -1e+30 }
  0x9e   :  { %v98_v55 = vsel %vm49_vm0, %v94_v53, 0.0  ;;  %v163_v60 = vsel %vm49_vm0, %v159_v59, -inf  ;;  %vm230_vm0 = vcmask 31768  }
  0xa3   :  { %v138_v63 = vpop.permute.xlu1 %137 }
  0xa4   :  { %v142_v3 = vsel %vm116_vm11, %v138_v63, 0.0 }
  0xa5   :  { %161 = vmax.xlane.f32.xlu1 %v160_v48  ;;  %v143_v5 = vadd.f32 %v142_v3, %v141_v2 }
  0xab   :  { %v879_v4 = vpop.permute.xlu1 %201 }
  0xad   :  { %77 = vadd.xlane.f32.xlu1 %v76_v50 }
  0xc4   :  { %99 = vadd.xlane.f32.xlu2 %v98_v55 }
  0xc5   :  { %96 = vadd.xlane.f32.xlu0 %v95_v58 }
  0xcc   :  { %164 = vmax.xlane.f32.xlu2 %v163_v60 }
  0xd3   :  { %v326_v13 = vpop.permute.xlu2 %325 }
  0xd4   :  { %74 = vadd.xlane.f32.xlu2 %v73_v62  ;;  %v331_v21 = vmin.f32 %v810_v27, %v326_v13  ;;  %v413_v24 = vmax.f32 %v810_v27, %v326_v13 }
  0xdb   :  { %v338_v16 = vpop.permute.xlu2 %337 }
  0xdc   :  { %v416_v18 = vmin.f32 %v827_v32, %v338_v16  ;;  %v342_v36 = vmax.f32 %v827_v32, %v338_v16 }
  0xed   :  { %v362_v7 = vpop.permute.xlu1 %361 }
  0xee   :  { %v882_v8 = vmul.f32 %v362_v7, %v816_v28 }
  0xf0   :  { %371 = vrot.lane.b32.xlu0 %v882_v8, %s724_s0 }
  0xf3   :  { %v328_v9 = vpop.permute.xlu0 %327 }
  0xf4   :  { %v414_v17 = vmax.f32 %v830_v33, %v328_v9  ;;  %v332_v25 = vmin.f32 %v830_v33, %v328_v9 }
  0xf5   :  { %v273_v38 = vpop.permute.xlu2 %272 }
  0xf6   :  { %v895_v19 = vsub.f32 %v414_v17, %v416_v18  ;;  %v280_v53 = vsel %vm276_vm12, %v273_v38, 0.0 }
  0xf8   :  { %203 = vrot.lane.b32.xlu0 %v771_v6, %s725_s1 }
  0xfb   :  { %v336_v10 = vpop.permute.xlu0 %335 }
  0xfc   :  { %v341_v20 = vmax.f32 %v807_v26, %v336_v10  ;;  %v415_v22 = vmin.f32 %v807_v26, %v336_v10  ;;  %v915_v26 = vsub.f32 %v332_v25, %v342_v36 }
  0xfe   :  { %v902_v23 = vsub.f32 %v331_v21, %v341_v20  ;;  %v906_v28 = vsub.f32 %v413_v24, %v415_v22  ;;  %v346_v27 = vmax.f32 %v915_v26, 0.0 }
 0x100   :  { %v345_v31 = vmax.f32 %v902_v23, 0.0 }
 0x105   :  { %v271_v11 = vpop.permute.xlu0 %270 }
 0x106   :  { %v277_v12 = vsel %vm276_vm12, %v271_v11, 0.0 }
 0x107   :  { %278 = vadd.xlane.f32.xlu2 %v277_v12 }
 0x10d   :  { %v364_v14 = vpop.permute.xlu0 %363 }
 0x10e   :  { %v889_v15 = vmul.f32 %v364_v14, %v358_v44  ;;  %v726_v44 = vmov 0.0  }
 0x10f   :  { %v224_v54 = vsel %vm222_vm5, 1.0, %v726_v44  ;;  %v225_v13 = vsel %vm223_vm6, 1.0, %v726_v44 }
 0x110   :  { %373 = vrot.lane.b32.xlu1 %v889_v15, %s724_s0  ;;  %v226_v56 = vmul.f32 %v224_v54, %v757_v0  ;;  %v227_v16 = vmul.f32 %v225_v13, %v771_v6 }
 0x112   :  { %v231_v58 = vsel %vm230_vm0, %v226_v56, 0.0  ;;  %v238_v21 = vsel %vm230_vm0, %v227_v16, 0.0 }
 0x113   :  { %v232_v59 = vrot.slane %v231_v58, 4  ;;  %v239_v36 = vrot.slane %v238_v21, 4 }
 0x115   :  { %v233_v61 = vadd.f32 %v232_v59, %v231_v58 }
 0x117   :  { %v234_v1 = vrot.slane %v233_v61, 2 }
 0x118   :  { %423 = vrot.lane.b32.xlu1 %v895_v19, %s725_s1  ;;  %v162_v37 = vpop.xlane.xlu1 %161 }
 0x119   :  { %v235_v30 = vadd.f32 %v234_v1, %v233_v61 }
 0x11b   :  { %v236_v3 = vrot.slane %v235_v30, 1 }
 0x11f   :  { %421 = vrot.lane.b32.xlu2 %v906_v28, %s725_s1 }
 0x120   :  { %349 = vrot.lane.b32.xlu1 %v345_v31, %s725_s1  ;;  %v78_v33 = vpop.xlane.xlu1 %77 }
 0x121   :  { %688 = vlog2.f32 %v78_v33 }
 0x127   :  { %351 = vrot.lane.b32.xlu2 %v346_v27, %s725_s1  ;;  %v689_v32 = vpop.eup %688 }
 0x128   :  { %v82_v39 = vmul.f32 0.6931472, %v689_v32 }
 0x12a   :  { %v84_v43 = vadd.f32 %v82_v39, %v848_v40 }
 0x137   :  { %v100_v41 = vpop.xlane.xlu2 %99 }
 0x138   :  { %v97_v42 = vpop.xlane.xlu0 %96  ;;  %v102_v46 = vsub.f32 %v100_v41, %v84_v43  ;;  %vm167_vm2 = vcmp.ge.f32.partialorder %v100_v41, %v848_v40 }
 0x139   :  { %vm166_vm13 = vcmp.ge.f32.partialorder %v97_v42, %v864_v52  ;;  %vm168_vm14 = vcmp.gt.f32.partialorder %v97_v42, %v162_v37  ;;  %v207_v37 = vsel %vm116_vm11, %v879_v4, 0.0 }
 0x13a   :  { %vm170_vm15 = vmand %vm166_vm13, %vm168_vm14  ;;  %v105_v49 = vsub.f32 0.0, %v102_v46 }
 0x13b   :  { %v172_v45 = vsel %vm170_vm15, 1.0, %v726_v44 }
 0x13c   :  { %v174_v47 = vmul.f32 %v172_v45, %v757_v0  ;;  %v107_v50 = vmul.f32 %v105_v49, %v771_v6 }
 0x13e   :  { %179 = vrot.lane.b32.xlu0 %v174_v47, %s725_s1 }
 0x13f   :  { %v165_v48 = vpop.xlane.xlu2 %164 }
 0x140   :  { %vm169_vm1 = vcmp.gt.f32.partialorder %v100_v41, %v165_v48 }
 0x141   :  { %vm171_vm3 = vmand %vm167_vm2, %vm169_vm1 }
 0x142   :  { %v173_v2 = vsel %vm171_vm3, 1.0, %v726_v44 }
 0x146   :  { %112 = vrot.lane.b32.xlu0 %v107_v50, %s723_s16 }
 0x147   :  { %v75_v51 = vpop.xlane.xlu2 %74 }
 0x148   :  { %690 = vlog2.f32 %v75_v51 }
 0x14a   :  { %281 = vadd.xlane.f32.xlu1 %v280_v53 }
 0x14e   :  { %v691_v55 = vpop.eup %690 }
 0x14f   :  { %v80_v57 = vmul.f32 0.6931472, %v691_v55 }
 0x150   :  { %144 = vadd.xlane.f32.xlu2 %v143_v5  ;;  %v175_v5 = vmul.f32 %v173_v2, %v771_v6 }
 0x151   :  { %v83_v60 = vadd.f32 %v80_v57, %v864_v52  ;;  %v237_v52 = vadd.f32 %v236_v3, %v235_v30 }
 0x153   :  { %v101_v62 = vsub.f32 %v97_v42, %v83_v60 }
 0x155   :  { %v104_v63 = vsub.f32 0.0, %v101_v62 }
 0x157   :  { %v106_v29 = vmul.f32 %v104_v63, %v757_v0 }
 0x162   :  { %v372_v9 = vpop.permute.xlu0 %371 }
 0x163   :  { %110 = vrot.lane.b32.xlu1 %v106_v29, %s723_s16  ;;  %v377_v38 = vadd.f32 %v372_v9, %v882_v8 }
 0x168   :  { %181 = vrot.lane.b32.xlu2 %v175_v5, %s725_s1 }
 0x16a   :  { %v204_v17 = vpop.permute.xlu0 %203 }
 0x16b   :  { %247 = vrot.lane.b32.xlu1 %v237_v52, %s727_s21  ;;  %v208_v34 = vsel %vm116_vm11, %v204_v17, 0.0 }
 0x16c   :  { %v209_v26 = vadd.f32 %v208_v34, %v207_v37 }
 0x17a   :  { %v279_v7 = vpop.xlane.xlu2 %278 }
 0x17b   :  { %v283_v40 = vmul.f32 %v279_v7, %v757_v0 }
 0x17d   :  { %288 = vrot.lane.b32.xlu0 %v283_v40, %s725_s1 }
 0x182   :  { %v422_v10 = vpop.permute.xlu2 %421  ;;  %v374_v11 = vpop.permute.xlu1 %373 }
 0x183   :  { %v946_v12 = vmul.f32 %v422_v10, %v906_v28  ;;  %v378_v22 = vadd.f32 %v374_v11, %v889_v15 }
 0x185   :  { %v431_v14 = vmax.f32 %v946_v12, 1e-07 }
 0x187   :  { %692 = vrcp.f32 %v431_v14  ;;  %v442_v23 = vand.u32 2147483647, %v431_v14  ;;  %v444_v55 = vand.u32 2147483648, %v431_v14  ;;  %vm438_vm5 = vweird.f32 %v431_v14 }
 0x189   :  { %vm990_vm7 = vcmp.eq.f32.partialorder %v442_v23, 8.507059e+37  ;;  %v445_v29 = vor.u32 1.1754944e-38, %v444_v55 }
 0x18a   :  { %v352_v18 = vpop.permute.xlu2 %351  ;;  %v424_v20 = vpop.permute.xlu1 %423 }
 0x18b   :  { %v958_v24 = vmul.f32 %v352_v18, %v346_v27  ;;  %v961_v25 = vmul.f32 %v424_v20, %v895_v19  ;;  %v240_v19 = vadd.f32 %v239_v36, %v238_v21 }
 0x18d   :  { %v965_v35 = vsub.f32 %v378_v22, %v958_v24  ;;  %v968_v28 = vmax.f32 %v961_v25, 1e-07  ;;  %v693_v27 = vpop.eup %692  ;;  %v241_v42 = vrot.slane %v240_v19, 2 }
 0x18e   :  { %v434_v32 = vmul.f32 %v693_v27, %v431_v14  ;;  %vm439_vm4 = vweird.f32 %v693_v27 }
 0x18f   :  { %v973_v15 = vmax.f32 %v965_v35, 1e-07  ;;  %694 = vrcp.f32 %v968_v28  ;;  %v242_v49 = vadd.f32 %v241_v42, %v240_v19  ;;  %vm986_vm6 = vmor %vm438_vm5, %vm439_vm4  ;;  %vm453_vm15 = vweird.f32 %v968_v28 }
 0x190   :  { %v435_v45 = vsub.f32 1.0, %v434_v32  ;;  %v459_v11 = vand.u32 2147483648, %v968_v28  ;;  %v457_v17 = vand.u32 2147483647, %v968_v28  ;;  %vm35_vm5 = vcmask 0  }
 0x191   :  { %696 = vrcp.f32 %v973_v15  ;;  %210 = vadd.xlane.f32.xlu2 %v209_v26  ;;  %v243_v53 = vrot.slane %v242_v49, 1  ;;  %vm403_vm10 = vweird.f32 %v973_v15  ;;  %v407_v5 = vand.u32 2147483647, %v973_v15  ;;  %36 = vst.msk [vmem:[#allocation3] sm:$0x1] %vm35_vm5, %v726_v44 }
 0x192   :  { %v350_v33 = vpop.permute.xlu1 %349  ;;  %v436_v50 = vmul.f32 %v693_v27, %v435_v45  ;;  %v409_v52 = vand.u32 2147483648, %v973_v15  ;;  %v460_v37 = vor.u32 1.1754944e-38, %v459_v11  ;;  %vm458_vm4 = vcmp.eq.f32.partialorder %v457_v17, 8.507059e+37  ;;  %37 = vst.msk [vmem:[#allocation3 + $0x1] sm:$0x1] %vm35_vm5, %v726_v44 }
 0x193   :  { %v355_v39 = vmul.f32 %v350_v33, %v345_v31  ;;  %v244_v60 = vadd.f32 %v243_v53, %v242_v49  ;;  %vm408_vm3 = vcmp.eq.f32.partialorder %v407_v5, 8.507059e+37 }
 0x194   :  { %v437_v54 = vadd.f32 %v693_v27, %v436_v50  ;;  %v410_v20 = vor.u32 1.1754944e-38, %v409_v52 }
 0x195   :  { %v379_v41 = vsub.f32 %v377_v38, %v355_v39  ;;  %v980_v4 = vpop.eup %694 }
 0x196   :  { %v449_v48 = vmul.f32 %v980_v4, %v968_v28  ;;  %v441_v1 = vsel %vm986_vm6, %v693_v27, %v437_v54  ;;  %vm454_vm12 = vweird.f32 %v980_v4  ;;  %v430_v27 = vsub.f32 %v961_v25, %v965_v35 }
 0x197   :  { %v697_v43 = vpop.eup %696  ;;  %v381_v46 = vmax.f32 %v379_v41, 1e-07  ;;  %v429_v10 = vsub.f32 %v946_v12, %v379_v41  ;;  %v446_v14 = vsel %vm990_vm7, %v445_v29, %v441_v1  ;;  %vm455_vm2 = vmor %vm453_vm15, %vm454_vm12  ;;  %vm466_vm6 = vcmp.gt.f32.partialorder %v757_v0, 0.0  ;;  %v550_v0 = vld [vmem:[%s1067_s2] sm:$0x1] }
 0x198   :  { %v399_v47 = vmul.f32 %v697_v43, %v973_v15  ;;  %v450_v51 = vsub.f32 1.0, %v449_v48  ;;  %vm404_vm8 = vweird.f32 %v697_v43  ;;  %v228_v45 = vld [vmem:[#allocation3] sm:$0x1]  ;;  %vm467_vm7 = vcmp.gt.f32.partialorder %v771_v6, 0.0 }
 0x199   :  { %698 = vrcp.f32 %v381_v46  ;;  %v394_v63 = vand.u32 2147483648, %v381_v46  ;;  %v392_v3 = vand.u32 2147483647, %v381_v46  ;;  %vm1000_vm13 = vmor %vm403_vm10, %vm404_vm8  ;;  %vm388_vm14 = vweird.f32 %v381_v46  ;;  %v229_v53 = vld [vmem:[#allocation3 + $0x1] sm:$0x1] }
 0x19a   :  { %v400_v8 = vsub.f32 1.0, %v399_v47  ;;  %v451_v58 = vmul.f32 %v980_v4, %v450_v51  ;;  %v447_v34 = vmul.f32 %v446_v14, %v429_v10 }
 0x19b   :  { %v395_v13 = vor.u32 1.1754944e-38, %v394_v63  ;;  %vm393_vm1 = vcmp.eq.f32.partialorder %v392_v3, 8.507059e+37 }
 0x19c   :  { %v401_v56 = vmul.f32 %v697_v43, %v400_v8  ;;  %v452_v40 = vadd.f32 %v980_v4, %v451_v58 }
 0x19e   :  { %v402_v30 = vadd.f32 %v697_v43, %v401_v56  ;;  %v456_v21 = vsel %vm455_vm2, %v980_v4, %v452_v40 }
 0x19f   :  { %v699_v31 = vpop.eup %698  ;;  %v461_v26 = vsel %vm458_vm4, %v460_v37, %v456_v21 }
 0x1a0   :  { %v384_v57 = vmul.f32 %v699_v31, %v381_v46  ;;  %vm389_vm9 = vweird.f32 %v699_v31  ;;  %v406_v16 = vsel %vm1000_vm13, %v697_v43, %v402_v30  ;;  %v462_v33 = vmul.f32 %v461_v26, %v430_v27 }
 0x1a1   :  { %vm390_vm0 = vmor %vm388_vm14, %vm389_vm9  ;;  %v411_v36 = vsel %vm408_vm3, %v410_v20, %v406_v16 }
 0x1a2   :  { %v385_v59 = vsub.f32 1.0, %v384_v57  ;;  %v412_v28 = vmul.f32 %v411_v36, %v958_v24 }
 0x1a4   :  { %v386_v2 = vmul.f32 %v699_v31, %v385_v59  ;;  %v464_v38 = vsub.f32 %v412_v28, %v462_v33 }
 0x1a6   :  { %v387_v9 = vadd.f32 %v699_v31, %v386_v2  ;;  %v469_v32 = vsub.f32 1.0, %v464_v38 }
 0x1a8   :  { %v391_v18 = vsel %vm390_vm0, %v699_v31, %v387_v9 }
 0x1a9   :  { %v396_v12 = vsel %vm393_vm1, %v395_v13, %v391_v18  ;;  %249 = vrot.lane.b32.xlu2 %v244_v60, %s727_s21  ;;  %v551_v60 = vld [vmem:[%s1067_s2 + $0x1] sm:$0x1]  ;;  %s728_s2 = smov 0.0  }
 0x1aa   :  { %v397_v22 = vmul.f32 %v396_v12, %v355_v39  ;;  %608 = sst [smem:[#allocation4 + $0x5]] %s728_s2 }
 0x1ab   :  { %610 = sst [smem:[#allocation4 + $0x6]] %s728_s2 }
 0x1ac   :  { %v463_v15 = vsub.f32 %v397_v22, %v447_v34  ;;  %612 = sst [smem:[#allocation4 + $0x7]] %s728_s2 }
 0x1ae   :  { %v468_v19 = vsub.f32 1.0, %v463_v15 }
 0x1b0   :  { %472 = vrot.lane.b32.xlu0 %v468_v19, %s727_s21  ;;  %v180_v24 = vpop.permute.xlu0 %179 }
 0x1b1   :  { %v185_v25 = vsel %vm116_vm11, %v180_v24, 0.0 }
 0x1b8   :  { %474 = vrot.lane.b32.xlu0 %v469_v32, %s727_s21  ;;  %v113_v46 = vpop.permute.xlu0 %112 }
 0x1b9   :  { %v118_v50 = vsel %vm116_vm11, %v113_v46, 0.0 }
 0x1bd   :  { %v282_v4 = vpop.xlane.xlu1 %281 }
 0x1be   :  { %v284_v8 = vmul.f32 %v282_v4, %v771_v6 }
 0x1c3   :  { %v145_v39 = vpop.xlane.xlu2 %144 }
 0x1c4   :  { %v146_v29 = vrot.slane %v145_v39, 4 }
 0x1c6   :  { %v147_v5 = vadd.f32 %v146_v29, %v145_v39 }
 0x1c8   :  { %v148_v11 = vrot.slane %v147_v5, 2 }
 0x1ca   :  { %v149_v20 = vadd.f32 %v148_v11, %v147_v5 }
 0x1cb   :  { %v182_v41 = vpop.permute.xlu2 %181 }
 0x1cc   :  { %v186_v35 = vsel %vm116_vm11, %v182_v41, 0.0  ;;  %v150_v28 = vrot.slane %v149_v20, 1 }
 0x1cd   :  { %v187_v42 = vadd.f32 %v186_v35, %v185_v25 }
 0x1ce   :  { %v151_v32 = vadd.f32 %v150_v28, %v149_v20 }
 0x1cf   :  { %188 = vadd.xlane.f32.xlu1 %v187_v42 }
 0x1d5   :  { %v111_v43 = vpop.permute.xlu1 %110 }
 0x1d6   :  { %v117_v47 = vsel %vm116_vm11, %v111_v43, 0.0 }
 0x1d7   :  { %v119_v44 = vadd.f32 %v118_v50, %v117_v47 }
 0x1dd   :  { %v248_v48 = vpop.permute.xlu1 %247 }
 0x1de   :  { %v253_v49 = vadd.f32 %v248_v48, %v228_v45 }
 0x1e0   :  { %256 = vst.msk [vmem:[#allocation3] sm:$0x1] %vm35_vm5, %v253_v49 }
 0x1e2   :  { %120 = vadd.xlane.f32.xlu0 %v119_v44 }
 0x1e7   :  { %v548_v61 = vld [vmem:[#allocation3] sm:$0x1] }
 0x1e8   :  { %290 = vrot.lane.b32.xlu1 %v284_v8, %s725_s1  ;;  %v552_v1 = vsub.f32 %v548_v61, %v550_v0 }
 0x1ea   :  { %v554_v3 = vand.u32 2147483647, %v552_v1 }
 0x1ec   :  { %v556_v9 = vsel %vm35_vm5, %v554_v3, 0.0 }
 0x1ef   :  { %v289_v54 = vpop.permute.xlu0 %288 }
 0x1f0   :  { %v294_v34 = vsel %vm116_vm11, %v289_v54, 0.0 }
 0x204   :  { %v211_v51 = vpop.xlane.xlu2 %210 }
 0x205   :  { %v212_v2 = vrot.slane %v211_v51, 4 }
 0x207   :  { %v213_v40 = vadd.f32 %v212_v2, %v211_v51  ;;  %v731_v51 = vmov 2.0  }
 0x209   :  { %v214_v17 = vrot.slane %v213_v40, 2 }
 0x20b   :  { %v215_v37 = vadd.f32 %v214_v17, %v213_v40 }
 0x20c   :  { %v250_v23 = vpop.permute.xlu2 %249 }
 0x20d   :  { %v254_v31 = vadd.f32 %v250_v23, %v229_v53  ;;  %v216_v33 = vrot.slane %v215_v37, 1  ;;  %v732_v53 = vmov 5.0  }
 0x20f   :  { %257 = vst.msk [vmem:[#allocation3 + $0x1] sm:$0x1] %vm35_vm5, %v254_v31  ;;  %v217_v24 = vadd.f32 %v216_v33, %v215_v37 }
 0x216   :  { %v549_v59 = vld [vmem:[#allocation3 + $0x1] sm:$0x1] }
 0x217   :  { %v553_v62 = vsub.f32 %v549_v59, %v551_v60 }
 0x219   :  { %v555_v30 = vand.u32 2147483647, %v553_v62 }
 0x21b   :  { %v557_v52 = vsel %vm35_vm5, %v555_v30, 0.0 }
 0x21c   :  { %v558_v10 = vadd.f32 %v557_v52, %v556_v9 }
 0x222   :  { %v473_v55 = vpop.permute.xlu0 %472 }
 0x223   :  { %v478_v56 = vsel %vm466_vm6, %v473_v55, 0.0 }
 0x224   :  { %482 = vrot.lane.b32.xlu2 %v478_v56, %s725_s1 }
 0x22a   :  { %v475_v57 = vpop.permute.xlu0 %474 }
 0x22b   :  { %v479_v58 = vsel %vm467_vm7, %v475_v57, 0.0 }
 0x22c   :  { %484 = vrot.lane.b32.xlu0 %v479_v58, %s725_s1 }
 0x242   :  { %v189_v63 = vpop.xlane.xlu1 %188 }
 0x243   :  { %v190_v6 = vrot.slane %v189_v63, 4 }
 0x245   :  { %v191_v7 = vadd.f32 %v190_v6, %v189_v63 }
 0x247   :  { %v192_v14 = vrot.slane %v191_v7, 2 }
 0x249   :  { %v193_v22 = vadd.f32 %v192_v14, %v191_v7 }
 0x24b   :  { %v194_v19 = vrot.slane %v193_v22, 1 }
 0x24d   :  { %v195_v39 = vadd.f32 %v194_v19, %v193_v22 }
 0x255   :  { %v121_v13 = vpop.xlane.xlu0 %120 }
 0x256   :  { %v122_v16 = vrot.slane %v121_v13, 4  ;;  %559 = vadd.xlane.f32.xlu0 %v558_v10 }
 0x258   :  { %v123_v18 = vadd.f32 %v122_v16, %v121_v13 }
 0x25a   :  { %v124_v12 = vrot.slane %v123_v18, 2  ;;  %v291_v21 = vpop.permute.xlu1 %290 }
 0x25b   :  { %v295_v36 = vsel %vm116_vm11, %v291_v21, 0.0 }
 0x25c   :  { %v296_v15 = vadd.f32 %v295_v36, %v294_v34  ;;  %v125_v26 = vadd.f32 %v124_v12, %v123_v18 }
 0x25e   :  { %297 = vadd.xlane.f32.xlu1 %v296_v15  ;;  %v126_v27 = vrot.slane %v125_v26, 1 }
 0x260   :  { %v127_v38 = vadd.f32 %v126_v27, %v125_v26 }
 0x262   :  { %648 = vpush %v127_v38 }
 0x263   :  { %650 = vpush %v151_v32 }
 0x264   :  { %652 = vpush %v195_v39 }
 0x265   :  { %654 = vpush %v217_v24 }
 0x27e   :  { %v483_v41 = vpop.permute.xlu2 %482 }
 0x27f   :  { %v488_v35 = vsel %vm116_vm11, %v483_v41, 0.0 }
 0x293   :  { %s1050_s26 = spop %648 }
 0x294   :  { %s651_s27 = spop %650 }
 0x295   :  { %s1052_s28 = spop %652  ;;  %s508_s4 = smax.f32 %s729_s30, %s651_s27 }
 0x296   :  { %s655_s29 = spop %654  ;;  %v509_v44 = vstv %s508_s4  ;;  %s527_s11 = smul.f32 100.0, %s1052_s28 }
 0x297   :  { %s529_s6 = smax.f32 %s730_s5, %s655_s29  ;;  %700 = vrcp.f32 %v509_v44  ;;  %v521_v40 = vand.u32 2147483648, %v509_v44  ;;  %vm515_vm9 = vweird.f32 %v509_v44  ;;  %v519_v17 = vand.u32 2147483647, %v509_v44 }
 0x298   :  { %v530_v8 = vstv %s529_s6 }
 0x299   :  { %702 = vrcp.f32 %v530_v8  ;;  %v542_v18 = vand.u32 2147483648, %v530_v8  ;;  %vm536_vm12 = vweird.f32 %v530_v8  ;;  %v540_v21 = vand.u32 2147483647, %v530_v8 }
 0x29a   :  { %704 = vrcp.f32 %v731_v51  ;;  %v522_v34 = vor.u32 1.1754944e-38, %v521_v40  ;;  %vm520_vm15 = vcmp.eq.f32.partialorder %v519_v17, 8.507059e+37 }
 0x29b   :  { %706 = vrcp.f32 %v732_v53  ;;  %v543_v27 = vor.u32 1.1754944e-38, %v542_v18  ;;  %vm541_vm1 = vcmp.eq.f32.partialorder %v540_v21, 8.507059e+37 }
 0x29d   :  { %v701_v23 = vpop.eup %700 }
 0x29e   :  { %v485_v25 = vpop.permute.xlu0 %484  ;;  %v511_v55 = vmul.f32 %v701_v23, %v509_v44 }
 0x29f   :  { %v489_v4 = vsel %vm116_vm11, %v485_v25, 0.0  ;;  %v703_v54 = vpop.eup %702  ;;  %vm516_vm11 = vweird.f32 %v701_v23 }
 0x2a0   :  { %v490_v42 = vadd.f32 %v489_v4, %v488_v35  ;;  %v705_v57 = vpop.eup %704  ;;  %v532_v58 = vmul.f32 %v703_v54, %v530_v8  ;;  %v512_v60 = vsub.f32 1.0, %v511_v55  ;;  %vm537_vm8 = vweird.f32 %v703_v54  ;;  %vm1054_vm10 = vmor %vm515_vm9, %vm516_vm11 }
 0x2a1   :  { %v707_v59 = vpop.eup %706  ;;  %v569_v0 = vmul.f32 2.0, %v705_v57  ;;  %vm538_vm13 = vmor %vm536_vm12, %vm537_vm8  ;;  %vm573_vm14 = vweird.f32 %v705_v57 }
 0x2a2   :  { %491 = vadd.xlane.f32.xlu2 %v490_v42  ;;  %v533_v62 = vsub.f32 1.0, %v532_v58  ;;  %v585_v63 = vmul.f32 5.0, %v707_v59  ;;  %v513_v6 = vmul.f32 %v701_v23, %v512_v60  ;;  %vm589_vm0 = vweird.f32 %v707_v59 }
 0x2a3   :  { %v570_v2 = vsub.f32 1.0, %v569_v0 }
 0x2a4   :  { %v534_v5 = vmul.f32 %v703_v54, %v533_v62  ;;  %v586_v52 = vsub.f32 1.0, %v585_v63  ;;  %v514_v10 = vadd.f32 %v701_v23, %v513_v6 }
 0x2a5   :  { %v571_v11 = vmul.f32 %v705_v57, %v570_v2 }
 0x2a6   :  { %v535_v14 = vadd.f32 %v703_v54, %v534_v5  ;;  %v587_v16 = vmul.f32 %v707_v59, %v586_v52  ;;  %v518_v22 = vsel %vm1054_vm10, %v701_v23, %v514_v10 }
 0x2a7   :  { %v572_v37 = vadd.f32 %v705_v57, %v571_v11  ;;  %v523_v19 = vsel %vm520_vm15, %v522_v34, %v518_v22 }
 0x2a8   :  { %v539_v26 = vsel %vm538_vm13, %v703_v54, %v535_v14  ;;  %v588_v28 = vadd.f32 %v707_v59, %v587_v16 }
 0x2a9   :  { %v544_v33 = vsel %vm541_vm1, %v543_v27, %v539_v26  ;;  %v574_v32 = vsel %vm573_vm14, %v705_v57, %v572_v37 }
 0x2aa   :  { %v590_v39 = vsel %vm589_vm0, %v707_v59, %v588_v28 }
 0x2c9   :  { %v560_v31 = vpop.xlane.xlu0 %559 }
 0x2ca   :  { %v561_v56 = vrot.slane %v560_v31, 4 }
 0x2cc   :  { %v562_v61 = vadd.f32 %v561_v56, %v560_v31 }
 0x2ce   :  { %v563_v30 = vrot.slane %v562_v61, 2 }
 0x2d0   :  { %v564_v9 = vadd.f32 %v563_v30, %v562_v61 }
 0x2d1   :  { %v298_v43 = vpop.xlane.xlu1 %297 }
 0x2d2   :  { %v299_v45 = vrot.slane %v298_v43, 4  ;;  %v565_v36 = vrot.slane %v564_v9, 1 }
 0x2d4   :  { %v300_v46 = vadd.f32 %v299_v45, %v298_v43  ;;  %v566_v38 = vadd.f32 %v565_v36, %v564_v9 }
 0x2d6   :  { %v301_v47 = vrot.slane %v300_v46, 2 }
 0x2d8   :  { %v302_v48 = vadd.f32 %v301_v47, %v300_v46 }
 0x2da   :  { %v303_v49 = vrot.slane %v302_v48, 1 }
 0x2dc   :  { %v304_v50 = vadd.f32 %v303_v49, %v302_v48 }
 0x2de   :  { %656 = vpush %v304_v50 }
 0x30f   :  { %s657_s10 = spop %656 }
 0x315   :  { %v492_v1 = vpop.xlane.xlu2 %491 }
 0x316   :  { %v493_v29 = vrot.slane %v492_v1, 4 }
 0x318   :  { %v494_v3 = vadd.f32 %v493_v29, %v492_v1 }
 0x31a   :  { %v495_v7 = vrot.slane %v494_v3, 2 }
 0x31c   :  { %v496_v13 = vadd.f32 %v495_v7, %v494_v3 }
 0x31e   :  { %v497_v20 = vrot.slane %v496_v13, 1 }
 0x320   :  { %v498_v15 = vadd.f32 %v497_v20, %v496_v13 }
 0x322   :  { %658 = vpush %v498_v15 }
 0x323   :  { %660 = vpush %v523_v19 }
 0x324   :  { %662 = vpush %v544_v33 }
 0x325   :  { %664 = vpush %v566_v38 }
 0x326   :  { %666 = vpush %v574_v32 }
 0x327   :  { %668 = vpush %v590_v39 }
 0x353   :  { %s659_s12 = spop %658 }
 0x354   :  { %s661_s13 = spop %660 }
 0x355   :  { %s525_s14 = smul.f32 %s661_s13, %s1050_s26  ;;  %s663_s15 = spop %662 }
 0x356   :  { %s546_s16 = smul.f32 %s663_s15, %s527_s11  ;;  %s665_s17 = spop %664 }
 0x357   :  { %578 = sst [smem:[#allocation4]] %s525_s14  ;;  %s667_s18 = spop %666 }
 0x358   :  { %s547_s19 = ssub.f32 100.0, %s546_s16  ;;  %s576_s20 = smul.f32 %s667_s18, %s665_s17 }
 0x359   :  { %s669_s0 = spop %668 }
 0x35a   :  { %580 = sst [smem:[#allocation4 + $0x1]] %s547_s19  ;;  %s592_s1 = smul.f32 %s669_s0, %s657_s10 }
 0x35b   :  { %582 = sst [smem:[#allocation4 + $0x2]] %s576_s20  ;;  %s604_s21 = smul.f32 %s669_s0, %s659_s12 }
 0x35c   :  { %594 = sst [smem:[#allocation4 + $0x3]] %s592_s1 }
 0x35d   :  { %606 = sst [smem:[#allocation4 + $0x4]] %s604_s21 }
 0x35e   :  { %621 = dma.smem_to_hbm %s733_s3, 16, %s619_s9, [#allocation5]  }
 0x35f   :  { %720 = dma.done.wait [#allocation5], 16  }
 0x360   :  { %721 = vsyncadd [#allocation5], 4294967280 }
 0x361   :  { %626 = sfence }
 0x362   :  { %627 = vsyncpa [#allocation5], 1 }

</bundles_post_ra>
